<compile_context>
chip_gen: v5e
topology: v5e:2x2
jax: 0.10.0
libtpu: 0.0.40
codegen_flags: <defaults>
</compile_context>

<pallas_src>
import functools

import jax
import jax.numpy as jnp
from jax.experimental import pallas as pl
from jax.experimental.pallas import tpu as pltpu

NEG_SLOPE = 0.01  # PyTorch LeakyReLU default


def _leaky_relu(z):
    # mul + max (2 VALU ops) instead of cmp + select (3).
    return jnp.maximum(z, NEG_SLOPE * z)


def _aggregator_kernel(
    x_ref, segm_t_ref,
    w1_ref, b1_ref, w2_ref, b2_ref, w3_ref, b3_ref,
    out_ref, *, emb_size, total_n, tile_n, need_mask,
):
    n = pl.program_id(0)

    @pl.when(n == 0)
    def _():
        out_ref[...] = jnp.zeros_like(out_ref)

    cdt = w2_ref.dtype                      # matmul operand dtype (bf16 or f32)
    x = x_ref[...]                          # [TN, D]

    # Fused layer 1 (shared LHS of f_m / g_m): [TN, D] @ [D, Hf+Hg], f32 acc.
    h = jnp.dot(x, w1_ref[...], preferred_element_type=jnp.float32)
    h = _leaky_relu(h + b1_ref[...])

    # Fused layer 2 (block-diagonal keeps the two branches independent).
    h = jnp.dot(h.astype(cdt), w2_ref[...], preferred_element_type=jnp.float32)
    h = _leaky_relu(h + b2_ref[...])

    # Fused layer 3: [TN, Hf+Hg] @ [Hf+Hg, E+1]; single lane-slice at the end.
    h = jnp.dot(h.astype(cdt), w3_ref[...], preferred_element_type=jnp.float32)
    h = h + b3_ref[...]

    f = h[:, :emb_size]                               # [TN, E]
    gate = h[:, emb_size:]                            # [TN, 1]
    gate = 0.5 * (jnp.tanh(0.5 * gate) + 1.0)         # exact sigmoid, one EUP push
    h_g = f * gate                                    # [TN, E]

    segm = segm_t_ref[...]                            # [G, TN], mask folded in

    if need_mask:
        # Ragged last tile: out-of-range block elements are unspecified, so
        # zero invalid rows of h_g and invalid columns of segm (cheap VPU).
        row = jax.lax.broadcasted_iota(jnp.int32, (tile_n, 1), 0) + n * tile_n
        h_g = jnp.where(row < total_n, h_g, 0.0)
        col = jax.lax.broadcasted_iota(jnp.int32, (1, tile_n), 1) + n * tile_n
        segm = jnp.where(col < total_n, segm, 0.0)

    # Per-graph segment sum on the MXU: [G, TN] @ [TN, E] -> [G, E].
    out_ref[...] += jnp.dot(segm, h_g, preferred_element_type=jnp.float32)


def aggregator_forward(x, mask, seg_ids, num_graphs, f_params, g_params,
                       *, tile_n=4096, matmul_dtype=jnp.bfloat16):
    """x: [N, D] f32; mask: [N, 1]; seg_ids: [N] int graph ids; returns [G, E] f32."""
    N, D = x.shape
    G = int(num_graphs)
    fw1, fb1, fw2, fb2, fw3, fb3 = f_params
    gw1, gb1, gw2, gb2, gw3, gb3 = g_params
    HF = fw1.shape[1]
    HG = gw1.shape[1]
    E = fw3.shape[1]
    f32 = jnp.float32

    # Fused layer-1 weights (shared LHS) and block-diagonal layers 2/3.
    w1 = jnp.concatenate([fw1, gw1], axis=1)                          # [D, HF+HG]
    b1 = jnp.concatenate([fb1, gb1], axis=1)                          # [1, HF+HG]
    w2 = jnp.block([[fw2, jnp.zeros((HF, HG), f32)],
                    [jnp.zeros((HG, HF), f32), gw2]])                 # [HF+HG, HF+HG]
    b2 = jnp.concatenate([fb2, gb2], axis=1)                          # [1, HF+HG]
    w3 = jnp.block([[fw3, jnp.zeros((HF, 1), f32)],
                    [jnp.zeros((HG, E), f32), gw3]])                  # [HF+HG, E+1]
    b3 = jnp.concatenate([fb3, gb3], axis=1)                          # [1, E+1]

    # Mask folded into the transposed one-hot segment matrix: [G, N], f32.
    segm_t = (jax.nn.one_hot(seg_ids, G, dtype=f32) * mask.astype(f32)).T

    x_c = x.astype(matmul_dtype)
    w1c, w2c, w3c = (w.astype(matmul_dtype) for w in (w1, w2, w3))
    b1f, b2f, b3f = (b.astype(f32) for b in (b1, b2, b3))

    # Node-tile size: a single full-extent tile when it fits, otherwise a
    # multiple of 128 rows (lane-dense segm_t blocks; satisfies f32/bf16
    # sublane packing).  No host-side padding of x — the ragged last tile is
    # masked inside the kernel.
    if int(tile_n) >= N:
        tn = N
    else:
        tn = max(128, (int(tile_n) // 128) * 128)
    grid_n = pl.cdiv(N, tn)
    need_mask = (N % tn) != 0

    kernel = functools.partial(_aggregator_kernel, emb_size=E, total_n=N,
                               tile_n=tn, need_mask=need_mask)

    def const2d(a):
        return pl.BlockSpec(a.shape, lambda n: (0, 0))

    weight_args = (w1c, b1f, w2c, b2f, w3c, b3f)

    return pl.pallas_call(
        kernel,
        out_shape=jax.ShapeDtypeStruct((G, E), f32),
        grid_spec=pltpu.PrefetchScalarGridSpec(
            num_scalar_prefetch=0,
            grid=(grid_n,),
            in_specs=[pl.BlockSpec((tn, D), lambda n: (n, 0)),     # x node tile
                      pl.BlockSpec((G, tn), lambda n: (0, n))]     # segm_t, lane-dense
                     + [const2d(a) for a in weight_args],          # resident weights
            out_specs=pl.BlockSpec((G, E), lambda n: (0, 0)),      # resident accumulator
        ),
        compiler_params=pltpu.CompilerParams(
            dimension_semantics=("arbitrary",),        # reduction over node tiles
            vmem_limit_bytes=32 * 1024 * 1024,         # well under v7x 64 MiB physical
        ),
    )(x_c, segm_t, *weight_args)


def make_linear3_params(key, in_size, out_size, hidden_size=None):
    """Deterministic synthetic init; weights stored as [in, out] (x @ W + b)."""
    if hidden_size is None:
        hidden_size = max(in_size, out_size)
    ks = jax.random.split(key, 6)
    s1 = 1.0 / jnp.sqrt(in_size)
    s2 = 1.0 / jnp.sqrt(hidden_size)
    w1 = jax.random.uniform(ks[0], (in_size, hidden_size), jnp.float32, -s1, s1)
    b1 = jax.random.uniform(ks[1], (1, hidden_size), jnp.float32, -s1, s1)
    w2 = jax.random.uniform(ks[2], (hidden_size, hidden_size), jnp.float32, -s2, s2)
    b2 = jax.random.uniform(ks[3], (1, hidden_size), jnp.float32, -s2, s2)
    w3 = jax.random.uniform(ks[4], (hidden_size, out_size), jnp.float32, -s2, s2)
    b3 = jax.random.uniform(ks[5], (1, out_size), jnp.float32, -s2, s2)
    return (w1, b1, w2, b2, w3, b3)


def reference_forward(x, mask, seg_ids, num_graphs, f_params, g_params):
    """Pure-JAX reference mirroring the PyTorch module semantics exactly."""
    fw1, fb1, fw2, fb2, fw3, fb3 = f_params
    gw1, gb1, gw2, gb2, gw3, gb3 = g_params
    dot = lambda a, b: jnp.dot(a, b, precision="highest")
    lr = lambda z: jnp.where(z >= 0, z, NEG_SLOPE * z)
    h = lr(dot(x, fw1) + fb1)
    h = lr(dot(h, fw2) + fb2)
    f = dot(h, fw3) + fb3
    g = lr(dot(x, gw1) + gb1)
    g = lr(dot(g, gw2) + gb2)
    g = jax.nn.sigmoid(dot(g, gw3) + gb3)
    h_g = f * g * mask
    seg = jax.nn.one_hot(seg_ids, num_graphs, dtype=x.dtype)   # [N, G]
    return dot(seg.T, h_g)                                      # [G, E]


if __name__ == "__main__":
    # Module-consistent shapes:
    #   gn.node_size = 32, gn.graph_emb_size = 32
    #   gn.all_node_vectors[iters]: [N, 32]; gn.graph_sizes = [130, 170] -> 2 graphs
    # N = 300 exercises multiple node tiles plus the in-kernel ragged-tail mask.
    node_size = 32
    graph_emb_size = 32
    graph_sizes = [130, 170]
    N = sum(graph_sizes)
    G = len(graph_sizes)

    key = jax.random.PRNGKey(0)
    kx, km, kf, kg = jax.random.split(key, 4)

    x = jax.random.normal(kx, (N, node_size), jnp.float32)
    mask = (jax.random.uniform(km, (N, 1)) > 0.2).astype(jnp.float32)
    seg_ids = jnp.repeat(jnp.arange(G), jnp.asarray(graph_sizes),
                         total_repeat_length=N)

    f_params = make_linear3_params(kf, node_size, graph_emb_size)
    g_params = make_linear3_params(kg, node_size, 1)

    ref = reference_forward(x, mask, seg_ids, G, f_params, g_params)

    # f32 matmul operands, tile_n=128 -> grid=(3,) with a ragged last tile.
    out_f32 = aggregator_forward(x, mask, seg_ids, G, f_params, g_params,
                                 tile_n=128, matmul_dtype=jnp.float32)
    out_f32 = jax.block_until_ready(out_f32)
    assert out_f32.shape == (G, graph_emb_size), out_f32.shape
    assert jnp.allclose(out_f32, ref, atol=5e-3, rtol=5e-3), "f32 mismatch vs reference"

    # bf16 matmul operands (default), multi-tile path with ragged-tail masking.
    out_bf16 = aggregator_forward(x, mask, seg_ids, G, f_params, g_params,
                                  tile_n=128)
    out_bf16 = jax.block_until_ready(out_bf16)
    assert jnp.allclose(out_bf16, ref, atol=0.75, rtol=0.05), "bf16 tiled mismatch"

    # Default config: bf16 operands, single full-extent node tile.
    out_def = aggregator_forward(x, mask, seg_ids, G, f_params, g_params)
    out_def = jax.block_until_ready(out_def)
    assert jnp.allclose(out_def, ref, atol=0.75, rtol=0.05), "bf16 default mismatch"

    print("KERNEL_OK")
</pallas_src>

<mosaic_0001>
module attributes {stable_mosaic.version = 11 : i64} {
  func.func @_aggregator_kernel(%arg0: i32, %arg1: memref<128x32xf32, #tpu.memory_space<vmem>>, %arg2: memref<2x128xf32, #tpu.memory_space<vmem>>, %arg3: memref<32x64xf32, #tpu.memory_space<vmem>>, %arg4: memref<1x64xf32, #tpu.memory_space<vmem>>, %arg5: memref<64x64xf32, #tpu.memory_space<vmem>>, %arg6: memref<1x64xf32, #tpu.memory_space<vmem>>, %arg7: memref<64x33xf32, #tpu.memory_space<vmem>>, %arg8: memref<1x33xf32, #tpu.memory_space<vmem>>, %arg9: memref<2x32xf32, #tpu.memory_space<vmem>>) attributes {dimension_semantics = [#tpu.dimension_semantics<arbitrary>], iteration_bounds = array<i64: 3>, scalar_prefetch = 0 : i64, scratch_operands = 0 : i64, tpu.core_type = #tpu.core_type<tc>, window_params = [{transform_indices = @transform_0, window_bounds = array<i64: 128, 32>}, {transform_indices = @transform_1, window_bounds = array<i64: 2, 128>}, {pipeline_mode = #tpu.pipeline_mode<synchronous>, transform_indices = @transform_2, window_bounds = array<i64: 32, 64>}, {pipeline_mode = #tpu.pipeline_mode<synchronous>, transform_indices = @transform_3, window_bounds = array<i64: 1, 64>}, {pipeline_mode = #tpu.pipeline_mode<synchronous>, transform_indices = @transform_4, window_bounds = array<i64: 64, 64>}, {pipeline_mode = #tpu.pipeline_mode<synchronous>, transform_indices = @transform_5, window_bounds = array<i64: 1, 64>}, {pipeline_mode = #tpu.pipeline_mode<synchronous>, transform_indices = @transform_6, window_bounds = array<i64: 64, 33>}, {pipeline_mode = #tpu.pipeline_mode<synchronous>, transform_indices = @transform_7, window_bounds = array<i64: 1, 33>}, {pipeline_mode = #tpu.pipeline_mode<synchronous>, transform_indices = @transform_8, window_bounds = array<i64: 2, 32>}]} {
    %c0_i32 = arith.constant 0 : i32
    %0 = arith.cmpi eq, %arg0, %c0_i32 : i32
    %1 = arith.extui %0 : i1 to i32
    %c0_i32_0 = arith.constant 0 : i32
    %2 = arith.cmpi ne, %1, %c0_i32_0 : i32
    scf.if %2 {
      %cst_32 = arith.constant 0.000000e+00 : f32
      %61 = vector.broadcast %cst_32 : f32 to vector<2x32xf32>
      %c0_33 = arith.constant 0 : index
      %c0_34 = arith.constant 0 : index
      %62 = vector.load %arg9[%c0_33, %c0_34] : memref<2x32xf32, #tpu.memory_space<vmem>>, vector<2x32xf32>
      tpu.vector_store %arg9[%c0_33, %c0_34], %61 {strides = array<i32>} : memref<2x32xf32, #tpu.memory_space<vmem>>, vector<2x32xf32>,
    } else {
    }
    %c0 = arith.constant 0 : index
    %c0_1 = arith.constant 0 : index
    %3 = vector.load %arg1[%c0, %c0_1] : memref<128x32xf32, #tpu.memory_space<vmem>>, vector<128x32xf32>
    %c0_2 = arith.constant 0 : index
    %c0_3 = arith.constant 0 : index
    %4 = vector.load %arg3[%c0_2, %c0_3] : memref<32x64xf32, #tpu.memory_space<vmem>>, vector<32x64xf32>
    %cst = arith.constant dense<0.000000e+00> : vector<128x64xf32>
    %5 = tpu.matmul %3, %4, %cst {dimension_numbers = #tpu.dot_dimension_numbers<[1], [0], [0], [1], [0, 0, 1, 1], [], []>} : vector<128x32xf32>, vector<32x64xf32>, vector<128x64xf32> -> vector<128x64xf32>
    %c0_4 = arith.constant 0 : index
    %c0_5 = arith.constant 0 : index
    %6 = vector.load %arg4[%c0_4, %c0_5] : memref<1x64xf32, #tpu.memory_space<vmem>>, vector<1x64xf32>
    %7 = vector.broadcast %6 : vector<1x64xf32> to vector<128x64xf32>
    %8 = arith.addf %5, %7 : vector<128x64xf32>
    %cst_6 = arith.constant 0.00999999977 : f32
    %9 = vector.broadcast %cst_6 : f32 to vector<128x64xf32>
    %10 = arith.mulf %9, %8 : vector<128x64xf32>
    %11 = arith.maximumf %8, %10 : vector<128x64xf32>
    %c0_7 = arith.constant 0 : index
    %c0_8 = arith.constant 0 : index
    %12 = vector.load %arg5[%c0_7, %c0_8] : memref<64x64xf32, #tpu.memory_space<vmem>>, vector<64x64xf32>
    %cst_9 = arith.constant dense<0.000000e+00> : vector<128x64xf32>
    %13 = tpu.matmul %11, %12, %cst_9 {dimension_numbers = #tpu.dot_dimension_numbers<[1], [0], [0], [1], [0, 0, 1, 1], [], []>} : vector<128x64xf32>, vector<64x64xf32>, vector<128x64xf32> -> vector<128x64xf32>
    %c0_10 = arith.constant 0 : index
    %c0_11 = arith.constant 0 : index
    %14 = vector.load %arg6[%c0_10, %c0_11] : memref<1x64xf32, #tpu.memory_space<vmem>>, vector<1x64xf32>
    %15 = vector.broadcast %14 : vector<1x64xf32> to vector<128x64xf32>
    %16 = arith.addf %13, %15 : vector<128x64xf32>
    %cst_12 = arith.constant 0.00999999977 : f32
    %17 = vector.broadcast %cst_12 : f32 to vector<128x64xf32>
    %18 = arith.mulf %17, %16 : vector<128x64xf32>
    %19 = arith.maximumf %16, %18 : vector<128x64xf32>
    %c0_13 = arith.constant 0 : index
    %c0_14 = arith.constant 0 : index
    %20 = vector.load %arg7[%c0_13, %c0_14] : memref<64x33xf32, #tpu.memory_space<vmem>>, vector<64x33xf32>
    %cst_15 = arith.constant dense<0.000000e+00> : vector<128x33xf32>
    %21 = tpu.matmul %19, %20, %cst_15 {dimension_numbers = #tpu.dot_dimension_numbers<[1], [0], [0], [1], [0, 0, 1, 1], [], []>} : vector<128x64xf32>, vector<64x33xf32>, vector<128x33xf32> -> vector<128x33xf32>
    %c0_16 = arith.constant 0 : index
    %c0_17 = arith.constant 0 : index
    %22 = vector.load %arg8[%c0_16, %c0_17] : memref<1x33xf32, #tpu.memory_space<vmem>>, vector<1x33xf32>
    %23 = vector.broadcast %22 : vector<1x33xf32> to vector<128x33xf32>
    %24 = arith.addf %21, %23 : vector<128x33xf32>
    %25 = vector.extract_strided_slice %24 {offsets = [0, 0], sizes = [128, 32], strides = [1, 1]} : vector<128x33xf32> to vector<128x32xf32>
    %26 = vector.extract_strided_slice %24 {offsets = [0, 32], sizes = [128, 1], strides = [1, 1]} : vector<128x33xf32> to vector<128x1xf32>
    %cst_18 = arith.constant 5.000000e-01 : f32
    %27 = vector.broadcast %cst_18 : f32 to vector<128x1xf32>
    %28 = arith.mulf %27, %26 : vector<128x1xf32>
    %29 = math.tanh %28 : vector<128x1xf32>
    %cst_19 = arith.constant 1.000000e+00 : f32
    %30 = vector.broadcast %cst_19 : f32 to vector<128x1xf32>
    %31 = arith.addf %29, %30 : vector<128x1xf32>
    %cst_20 = arith.constant 5.000000e-01 : f32
    %32 = vector.broadcast %cst_20 : f32 to vector<128x1xf32>
    %33 = arith.mulf %32, %31 : vector<128x1xf32>
    %34 = vector.broadcast %33 : vector<128x1xf32> to vector<128x32xf32>
    %35 = arith.mulf %25, %34 : vector<128x32xf32>
    %c0_21 = arith.constant 0 : index
    %c0_22 = arith.constant 0 : index
    %36 = vector.load %arg2[%c0_21, %c0_22] : memref<2x128xf32, #tpu.memory_space<vmem>>, vector<2x128xf32>
    %37 = tpu.iota {dimensions = array<i32: 0>} : vector<128x1xi32>
    %c128_i32 = arith.constant 128 : i32
    %38 = arith.muli %arg0, %c128_i32 : i32
    %39 = vector.broadcast %38 : i32 to vector<128x1xi32>
    %40 = arith.addi %37, %39 : vector<128x1xi32>
    %c300_i32 = arith.constant 300 : i32
    %41 = vector.broadcast %c300_i32 : i32 to vector<128x1xi32>
    %42 = arith.cmpi slt, %40, %41 : vector<128x1xi32>
    %cst_23 = arith.constant 0.000000e+00 : f32
    %43 = vector.shape_cast %42 : vector<128x1xi1> to vector<128x1xi1>
    %44 = vector.broadcast %43 : vector<128x1xi1> to vector<128x32xi1>
    %45 = vector.broadcast %cst_23 : f32 to vector<128x32xf32>
    %46 = arith.select %44, %35, %45 : vector<128x32xi1>, vector<128x32xf32>
    %47 = tpu.iota {dimensions = array<i32: 1>} : vector<1x128xi32>
    %c128_i32_24 = arith.constant 128 : i32
    %48 = arith.muli %arg0, %c128_i32_24 : i32
    %49 = vector.broadcast %48 : i32 to vector<1x128xi32>
    %50 = arith.addi %47, %49 : vector<1x128xi32>
    %c300_i32_25 = arith.constant 300 : i32
    %51 = vector.broadcast %c300_i32_25 : i32 to vector<1x128xi32>
    %52 = arith.cmpi slt, %50, %51 : vector<1x128xi32>
    %cst_26 = arith.constant 0.000000e+00 : f32
    %53 = vector.shape_cast %52 : vector<1x128xi1> to vector<1x128xi1>
    %54 = vector.broadcast %53 : vector<1x128xi1> to vector<2x128xi1>
    %55 = vector.broadcast %cst_26 : f32 to vector<2x128xf32>
    %56 = arith.select %54, %36, %55 : vector<2x128xi1>, vector<2x128xf32>
    %c0_27 = arith.constant 0 : index
    %c0_28 = arith.constant 0 : index
    %57 = vector.load %arg9[%c0_27, %c0_28] : memref<2x32xf32, #tpu.memory_space<vmem>>, vector<2x32xf32>
    %cst_29 = arith.constant dense<0.000000e+00> : vector<2x32xf32>
    %58 = tpu.matmul %56, %46, %cst_29 {dimension_numbers = #tpu.dot_dimension_numbers<[1], [0], [0], [1], [0, 0, 1, 1], [], []>} : vector<2x128xf32>, vector<128x32xf32>, vector<2x32xf32> -> vector<2x32xf32>
    %59 = arith.addf %57, %58 : vector<2x32xf32>
    %c0_30 = arith.constant 0 : index
    %c0_31 = arith.constant 0 : index
    %60 = vector.load %arg9[%c0_30, %c0_31] : memref<2x32xf32, #tpu.memory_space<vmem>>, vector<2x32xf32>
    tpu.vector_store %arg9[%c0_30, %c0_31], %59 {strides = array<i32>} : memref<2x32xf32, #tpu.memory_space<vmem>>, vector<2x32xf32>,
    return
  }
  func.func @transform_0(%arg0: i32) -> (i32, i32) {
    %c0_i32 = arith.constant 0 : i32
    %c0_i32_0 = arith.constant 0 : i32
    return %arg0, %c0_i32 : i32, i32
  }
  func.func @transform_1(%arg0: i32) -> (i32, i32) {
    %c0_i32 = arith.constant 0 : i32
    %c0_i32_0 = arith.constant 0 : i32
    return %c0_i32, %arg0 : i32, i32
  }
  func.func @transform_2(%arg0: i32) -> (i32, i32) {
    %c0_i32 = arith.constant 0 : i32
    %c0_i32_0 = arith.constant 0 : i32
    %c0_i32_1 = arith.constant 0 : i32
    return %c0_i32, %c0_i32_0 : i32, i32
  }
  func.func @transform_3(%arg0: i32) -> (i32, i32) {
    %c0_i32 = arith.constant 0 : i32
    %c0_i32_0 = arith.constant 0 : i32
    %c0_i32_1 = arith.constant 0 : i32
    return %c0_i32, %c0_i32_0 : i32, i32
  }
  func.func @transform_4(%arg0: i32) -> (i32, i32) {
    %c0_i32 = arith.constant 0 : i32
    %c0_i32_0 = arith.constant 0 : i32
    %c0_i32_1 = arith.constant 0 : i32
    return %c0_i32, %c0_i32_0 : i32, i32
  }
  func.func @transform_5(%arg0: i32) -> (i32, i32) {
    %c0_i32 = arith.constant 0 : i32
    %c0_i32_0 = arith.constant 0 : i32
    %c0_i32_1 = arith.constant 0 : i32
    return %c0_i32, %c0_i32_0 : i32, i32
  }
  func.func @transform_6(%arg0: i32) -> (i32, i32) {
    %c0_i32 = arith.constant 0 : i32
    %c0_i32_0 = arith.constant 0 : i32
    %c0_i32_1 = arith.constant 0 : i32
    return %c0_i32, %c0_i32_0 : i32, i32
  }
  func.func @transform_7(%arg0: i32) -> (i32, i32) {
    %c0_i32 = arith.constant 0 : i32
    %c0_i32_0 = arith.constant 0 : i32
    %c0_i32_1 = arith.constant 0 : i32
    return %c0_i32, %c0_i32_0 : i32, i32
  }
  func.func @transform_8(%arg0: i32) -> (i32, i32) {
    %c0_i32 = arith.constant 0 : i32
    %c0_i32_0 = arith.constant 0 : i32
    %c0_i32_1 = arith.constant 0 : i32
    return %c0_i32, %c0_i32_0 : i32, i32
  }
}

</mosaic_0001>

<bundles_post_ra>
// kernel: tpu_custom_call.1
= control target key start
LH: loop header
LB: loop body
LE: loop exit
PB: predicated region body
PF: predicated region fallthrough
CT: control target
= control target key end

     0   :  { %13 = vsyncpa [#allocation3], 0  ;;  %s1382_s27 = smov 0   ;;  %s1720_s0 = inlined_call_operand.vmem [shape: f32[300,32], index: 0, kind: input, shape index: {}]   ;;  %s1721_s1 = inlined_call_operand.vmem [shape: f32[2,300], index: 1, kind: input, shape index: {}]   ;;  %s1722_s2 = inlined_call_operand.vmem [shape: f32[32,64], index: 2, kind: input, shape index: {}]   ;;  %s1723_s3 = inlined_call_operand.vmem [shape: f32[1,64], index: 3, kind: input, shape index: {}]   ;;  %s1724_s4 = inlined_call_operand.vmem [shape: f32[64,64], index: 4, kind: input, shape index: {}]   ;;  %s1725_s5 = inlined_call_operand.vmem [shape: f32[1,64], index: 5, kind: input, shape index: {}]   ;;  %s1726_s6 = inlined_call_operand.vmem [shape: f32[64,33], index: 6, kind: input, shape index: {}]   ;;  %s1727_s7 = inlined_call_operand.vmem [shape: f32[1,33], index: 7, kind: input, shape index: {}]   ;;  %s1728_s8 = inlined_call_operand.hbm [shape: f32[2,32], index: 8, kind: output, shape index: {}]  }
   0x1 LB: > { %s1388_s28 = sadd.s32 4294967295, %s1332_s27   ;;  %p1144_p0 = scmp.ge.s32.totalorder %s1332_s27, 1  ;;  %s1332_s27 = sphi %s1382_s27, %s19_s27  }
   0x2   : > { %p276_p1 = scmp.lt.s32.totalorder %s1332_s27, 4 }
   0x4   : > { %p277_p2 = pnand %p1144_p0, %p276_p1 }
   0x5   : > { %s1145_s29 = sshll.u32 (!%p277_p2), %s1388_s28, 4  ;;  %p327_p3 = scmp.lt.s32.totalorder (!%p277_p2), %s1388_s28, 2 }
   0x6   : > { %280 = sbr.rel (%p277_p2) target bundleno = 852 (0x354), region = 52  ;;  %p318_p4 = scmp.lt.s32.totalorder (!%p277_p2), %s1145_s29, 37 }
   0x7   : > { %p1148_p5 = scmp.ne.s32.totalorder (!%p277_p2), %s1388_s28, 0 }
   0xb   : > { %s328_s30 = scalar_select %p327_p3, %s1388_s28, 2 }
   0xc   : > { %s1730_s29 = smov (!%p318_p4, %s1145_s29), 37  ;;  %334 = sbr.rel (%p1148_p5) target bundleno = 19 (0x13), region = 56 }
   0xd   : > { %s1147_s9 = sshll.u32 %s328_s30, 1  ;;  %s1146_s10 = sshll.u32 %s1730_s29, 3 }
   0xe   : > { %s1398_s13 = scalar_lea.vmem %s1721_s1, %s1147_s9  ;;  %s1403_s16 = scalar_lea.vmem %s1720_s0, %s1146_s10 }
  0x11   : > { %vm335_vm0 = vcmask 254976   ;;  %v1334_v0 = vmov 0.0  }
  0x12   : > { %336 = vst.msk [vmem:[#allocation2] sm:$0x3] %vm335_vm0, %v1334_v0 }
  0x13 PF: > { %v356_v1 = vld [vmem:[%s1722_s2 + $0x18] sm:$0xff]  ;;  %v355_v2 = vld [vmem:[%s1722_s2 + $0x10] sm:$0xff]  ;;  %v354_v3 = vld [vmem:[%s1722_s2 + $0x8] sm:$0xff]  ;;  %vm361_vm1 = vcmask 261120   ;;  %vm519_vm2 = vcmask 523264   ;;  %s1197_s25 = sshll.u32 %s1388_s28, 7 }
  0x14   : > { %422 = vmatpush.msra.mxu0 %v356_v1  ;;  %1219 = vmatpush.msra.mxu3 %v356_v1  ;;  %v353_v4 = vld [vmem:[%s1722_s2] sm:$0xff]  ;;  %v338_v6 = vld [vmem:[%s1403_s16 + $0x8] sm:$0xff]  ;;  %v339_v7 = vld [vmem:[%s1403_s16 + $0x10] sm:$0xff]  ;;  %s1336_s26 = smov [#allocation2]   ;;  %s1089_s10 = sshll.u32 %s1728_s8, 4  ;;  %s1090_s10 = int_to_ptr.hbm [resolvable:$true] %s1089_s10 }
  0x15   : > { %v337_v5 = vld [vmem:[%s1403_s16] sm:$0xff]  ;;  %v340_v8 = vld [vmem:[%s1403_s16 + $0x18] sm:$0xff]  ;;  %v342_v10 = vld [vmem:[%s1403_s16 + $0x28] sm:$0xff]  ;;  %s1087_s29 = sshll.u32 %s1336_s26, 4  ;;  %p1243_p6 = scmp.eq.s32.totalorder %s1388_s28, 2  ;;  %s1088_s29 = int_to_ptr.vmem [resolvable:$true] %s1087_s29 }
  0x16   : > { %423 = vmatpush.msra.mxu0 %v355_v2  ;;  %1220 = vmatpush.msra.mxu3 %v355_v2  ;;  %v341_v9 = vld [vmem:[%s1403_s16 + $0x20] sm:$0xff]  ;;  %v343_v11 = vld [vmem:[%s1403_s16 + $0x30] sm:$0xff]  ;;  %v344_v12 = vld [vmem:[%s1403_s16 + $0x38] sm:$0xff] }
  0x17   : > { %v345_v13 = vld [vmem:[%s1403_s16 + $0x40] sm:$0xff]  ;;  %v350_v14 = vld [vmem:[%s1403_s16 + $0x68] sm:$0xff]  ;;  %v514_v15 = vld [vmem:[%s1724_s4 + $0x38] sm:$0xff] }
  0x18   : > { %424 = vmatpush.msra.mxu0 %v354_v3  ;;  %1221 = vmatpush.msra.mxu3 %v354_v3  ;;  %v513_v16 = vld [vmem:[%s1724_s4 + $0x30] sm:$0xff]  ;;  %v512_v17 = vld [vmem:[%s1724_s4 + $0x28] sm:$0xff]  ;;  %v511_v18 = vld [vmem:[%s1724_s4 + $0x20] sm:$0xff] }
  0x19   : > { %576 = vmatpush.msra.mxu1 %v514_v15  ;;  %v346_v19 = vld [vmem:[%s1403_s16 + $0x48] sm:$0xff]  ;;  %v351_v20 = vld [vmem:[%s1403_s16 + $0x70] sm:$0xff]  ;;  %v352_v22 = vld [vmem:[%s1403_s16 + $0x78] sm:$0xff] }
  0x1a   : > { %425 = vmatpush.msra.mxu0 %v353_v4  ;;  %1222 = vmatpush.msra.mxu3 %v353_v4  ;;  %v347_v21 = vld [vmem:[%s1403_s16 + $0x50] sm:$0xff]  ;;  %v348_v23 = vld [vmem:[%s1403_s16 + $0x58] sm:$0xff]  ;;  %v349_v25 = vld [vmem:[%s1403_s16 + $0x60] sm:$0xff] }
  0x1b   : > { %1149 = vmatmul.msk.f32.vlgmr.msra.gmra.mxu0 %vm361_vm1, %v337_v5  ;;  %1162 = vmatmul.msk.f32.vlgmr.msra.gmra.mxu3 %vm361_vm1, %v350_v14  ;;  %v510_v24 = vld [vmem:[%s1724_s4 + $0x18] sm:$0xff]  ;;  %v509_v26 = vld [vmem:[%s1724_s4 + $0x10] sm:$0xff]  ;;  %v508_v27 = vld [vmem:[%s1724_s4 + $0x8] sm:$0xff] }
  0x1c   : > { %1223 = vmatpush.msrb.mxu3 %v514_v15  ;;  %577 = vmatpush.msra.mxu1 %v513_v16  ;;  %v507_v28 = vld [vmem:[%s1724_s4] sm:$0xff] }
  0x1d   : > { %v1477_v29 = vld [vmem:[%s1723_s3] ss:$0 sm:$0xff] }
  0x1e   : > { %1224 = vmatpush.msrb.mxu3 %v513_v16  ;;  %578 = vmatpush.msra.mxu1 %v512_v17 }
  0x20   : > { %1225 = vmatpush.msrb.mxu3 %v512_v17  ;;  %579 = vmatpush.msra.mxu1 %v511_v18  ;;  %v670_v17 = vld [vmem:[%s1726_s6 + $0x28] sm:$0xff] }
  0x22   : > { %1226 = vmatpush.msrb.mxu3 %v511_v18  ;;  %580 = vmatpush.msra.mxu1 %v510_v24  ;;  %v669_v18 = vld [vmem:[%s1726_s6 + $0x20] sm:$0xff] }
  0x23   : > { %1150 = vmatmul.msk.f32.gmra.mxu0 %vm361_vm1, %v338_v6  ;;  %1163 = vmatmul.msk.f32.gmra.mxu3 %vm361_vm1, %v351_v20 }
  0x24   : > { %1227 = vmatpush.msrb.mxu3 %v510_v24  ;;  %581 = vmatpush.msra.mxu1 %v509_v26 }
  0x26   : > { %1228 = vmatpush.msrb.mxu3 %v509_v26  ;;  %582 = vmatpush.msra.mxu1 %v508_v27  ;;  %v666_v26 = vld [vmem:[%s1726_s6 + $0x8] sm:$0xff] }
  0x28   : > { %1229 = vmatpush.msrb.mxu3 %v508_v27  ;;  %583 = vmatpush.msra.mxu1 %v507_v28 }
  0x2a   : > { %1230 = vmatpush.msrb.mxu3 %v507_v28 }
  0x2b   : > { %1151 = vmatmul.msk.f32.gmra.mxu0 %vm361_vm1, %v339_v7  ;;  %1164 = vmatmul.msk.f32.gmra.mxu3 %vm361_vm1, %v352_v22  ;;  %v668_v22 = vld [vmem:[%s1726_s6 + $0x18] sm:$0xff] }
  0x33   : > { %1152 = vmatmul.msk.f32.gmra.mxu0 %vm361_vm1, %v340_v8 }
  0x3b   : > { %1153 = vmatmul.msk.f32.gmra.mxu0 %vm361_vm1, %v341_v9 }
  0x43   : > { %1154 = vmatmul.msk.f32.gmra.mxu0 %vm361_vm1, %v342_v10  ;;  %v672_v10 = vld [vmem:[%s1726_s6 + $0x38] sm:$0xff] }
  0x44   : > { %733 = vmatpush.msra.mxu2 %v672_v10  ;;  %1231 = vmatpush.msra.mxu3 %v672_v10 }
  0x4b   : > { %1155 = vmatmul.msk.f32.gmra.mxu0 %vm361_vm1, %v343_v11  ;;  %v671_v11 = vld [vmem:[%s1726_s6 + $0x30] sm:$0xff] }
  0x4c   : > { %734 = vmatpush.msra.mxu2 %v671_v11  ;;  %1232 = vmatpush.msra.mxu3 %v671_v11 }
  0x4e   : > { %735 = vmatpush.msra.mxu2 %v670_v17  ;;  %1233 = vmatpush.msra.mxu3 %v670_v17 }
  0x50   : > { %736 = vmatpush.msra.mxu2 %v669_v18  ;;  %1234 = vmatpush.msra.mxu3 %v669_v18 }
  0x52   : > { %737 = vmatpush.msra.mxu2 %v668_v22  ;;  %1235 = vmatpush.msra.mxu3 %v668_v22 }
  0x53   : > { %1156 = vmatmul.msk.f32.gmra.mxu0 %vm361_vm1, %v344_v12 }
  0x5b   : > { %1157 = vmatmul.msk.f32.gmra.mxu0 %vm361_vm1, %v345_v13 }
  0x63   : > { %1158 = vmatmul.msk.f32.gmra.mxu0 %vm361_vm1, %v346_v19 }
  0x6b   : > { %1159 = vmatmul.msk.f32.gmra.mxu0 %vm361_vm1, %v347_v21 }
  0x73   : > { %1160 = vmatmul.msk.f32.gmra.mxu0 %vm361_vm1, %v348_v23 }
  0x7b   : > { %1161 = vmatmul.msk.f32.gmra.mxu0 %vm361_vm1, %v349_v25  ;;  %v667_v25 = vld [vmem:[%s1726_s6 + $0x10] sm:$0xff] }
  0x7c   : > { %738 = vmatpush.msra.mxu2 %v667_v25  ;;  %1236 = vmatpush.msra.mxu3 %v667_v25 }
  0x7e   : > { %739 = vmatpush.msra.mxu2 %v666_v26  ;;  %1237 = vmatpush.msra.mxu3 %v666_v26 }
  0x98   : > { %v427_v30 = vpop.f32.mrf.mxu0 }
  0x99   : > { %v428_v31 = vadd.f32 %v1477_v29, %v427_v30  ;;  %v665_v30 = vld [vmem:[%s1726_s6] sm:$0xff] }
  0x9a   : > { %740 = vmatpush.msra.mxu2 %v665_v30  ;;  %1238 = vmatpush.msra.mxu3 %v665_v30 }
  0x9b   : > { %v475_v32 = vmul.f32 0.01, %v428_v31 }
  0x9d   : > { %v491_v33 = vmax.f32 %v428_v31, %v475_v32 }
  0x9e   : > { %v466_v16 = vpop.f32.mrf.mxu3 }
  0x9f   : > { %1165 = vmatmul.msk.f32.vlgmr.msra.gmra.mxu1 %vm519_vm2, %v491_v33  ;;  %v467_v24 = vadd.f32 %v1477_v29, %v466_v16 }
  0xa0   : > { %v430_v34 = vpop.f32.mrf.mxu0 }
  0xa1   : > { %v431_v35 = vadd.f32 %v1477_v29, %v430_v34  ;;  %v488_v28 = vmul.f32 0.01, %v467_v24 }
  0xa3   : > { %v476_v36 = vmul.f32 0.01, %v431_v35  ;;  %v504_v31 = vmax.f32 %v467_v24, %v488_v28 }
  0xa5   : > { %v492_v37 = vmax.f32 %v431_v35, %v476_v36 }
  0xa6   : > { %v469_v27 = vpop.f32.mrf.mxu3 }
  0xa7   : > { %1166 = vmatmul.msk.f32.gmra.mxu1 %vm519_vm2, %v492_v37  ;;  %v470_v32 = vadd.f32 %v1477_v29, %v469_v27 }
  0xa8   : > { %v433_v38 = vpop.f32.mrf.mxu0 }
  0xa9   : > { %v434_v39 = vadd.f32 %v1477_v29, %v433_v38  ;;  %v489_v33 = vmul.f32 0.01, %v470_v32 }
  0xab   : > { %v477_v40 = vmul.f32 0.01, %v434_v39  ;;  %v505_v35 = vmax.f32 %v470_v32, %v489_v33 }
  0xad   : > { %v493_v41 = vmax.f32 %v434_v39, %v477_v40  ;;  %v1538_v39 = vld [vmem:[%s1725_s5] ss:$0 sm:$0xff] }
  0xae   : > { %v472_v34 = vpop.f32.mrf.mxu3 }
  0xaf   : > { %1167 = vmatmul.msk.f32.gmra.mxu1 %vm519_vm2, %v493_v41  ;;  %v473_v36 = vadd.f32 %v1477_v29, %v472_v34 }
  0xb0   : > { %v436_v42 = vpop.f32.mrf.mxu0 }
  0xb1   : > { %v437_v43 = vadd.f32 %v1477_v29, %v436_v42  ;;  %v490_v37 = vmul.f32 0.01, %v473_v36 }
  0xb3   : > { %v478_v44 = vmul.f32 0.01, %v437_v43  ;;  %v506_v38 = vmax.f32 %v473_v36, %v490_v37 }
  0xb5   : > { %v494_v45 = vmax.f32 %v437_v43, %v478_v44 }
  0xb7   : > { %1168 = vmatmul.msk.f32.gmra.mxu1 %vm519_vm2, %v494_v45 }
  0xb8   : > { %v439_v46 = vpop.f32.mrf.mxu0 }
  0xb9   : > { %v440_v47 = vadd.f32 %v1477_v29, %v439_v46 }
  0xbb   : > { %v479_v48 = vmul.f32 0.01, %v440_v47 }
  0xbd   : > { %v495_v49 = vmax.f32 %v440_v47, %v479_v48 }
  0xbf   : > { %1169 = vmatmul.msk.f32.gmra.mxu1 %vm519_vm2, %v495_v49 }
  0xc0   : > { %v442_v50 = vpop.f32.mrf.mxu0 }
  0xc1   : > { %v443_v51 = vadd.f32 %v1477_v29, %v442_v50 }
  0xc3   : > { %v480_v52 = vmul.f32 0.01, %v443_v51 }
  0xc5   : > { %v496_v53 = vmax.f32 %v443_v51, %v480_v52 }
  0xc7   : > { %1170 = vmatmul.msk.f32.gmra.mxu1 %vm519_vm2, %v496_v53 }
  0xc8   : > { %v445_v54 = vpop.f32.mrf.mxu0 }
  0xc9   : > { %v446_v55 = vadd.f32 %v1477_v29, %v445_v54 }
  0xcb   : > { %v481_v56 = vmul.f32 0.01, %v446_v55 }
  0xcd   : > { %v497_v57 = vmax.f32 %v446_v55, %v481_v56 }
  0xcf   : > { %1171 = vmatmul.msk.f32.gmra.mxu1 %vm519_vm2, %v497_v57 }
  0xd0   : > { %v448_v58 = vpop.f32.mrf.mxu0 }
  0xd1   : > { %v449_v59 = vadd.f32 %v1477_v29, %v448_v58 }
  0xd3   : > { %v482_v60 = vmul.f32 0.01, %v449_v59 }
  0xd5   : > { %v498_v61 = vmax.f32 %v449_v59, %v482_v60 }
  0xd7   : > { %1172 = vmatmul.msk.f32.gmra.mxu1 %vm519_vm2, %v498_v61 }
  0xd8   : > { %v451_v62 = vpop.f32.mrf.mxu0 }
  0xd9   : > { %v452_v63 = vadd.f32 %v1477_v29, %v451_v62 }
  0xdb   : > { %v483_v0 = vmul.f32 0.01, %v452_v63 }
  0xdd   : > { %v499_v1 = vmax.f32 %v452_v63, %v483_v0 }
  0xdf   : > { %1173 = vmatmul.msk.f32.gmra.mxu1 %vm519_vm2, %v499_v1 }
  0xe0   : > { %v454_v2 = vpop.f32.mrf.mxu0 }
  0xe1   : > { %v455_v3 = vadd.f32 %v1477_v29, %v454_v2 }
  0xe3   : > { %v484_v4 = vmul.f32 0.01, %v455_v3 }
  0xe5   : > { %v500_v5 = vmax.f32 %v455_v3, %v484_v4 }
  0xe7   : > { %1174 = vmatmul.msk.f32.gmra.mxu1 %vm519_vm2, %v500_v5 }
  0xe8   : > { %v457_v6 = vpop.f32.mrf.mxu0 }
  0xe9   : > { %v458_v7 = vadd.f32 %v1477_v29, %v457_v6 }
  0xeb   : > { %v485_v8 = vmul.f32 0.01, %v458_v7 }
  0xed   : > { %v501_v9 = vmax.f32 %v458_v7, %v485_v8 }
  0xef   : > { %1175 = vmatmul.msk.f32.gmra.mxu1 %vm519_vm2, %v501_v9 }
  0xf0   : > { %v460_v12 = vpop.f32.mrf.mxu0 }
  0xf1   : > { %v461_v13 = vadd.f32 %v1477_v29, %v460_v12 }
  0xf3   : > { %v486_v14 = vmul.f32 0.01, %v461_v13 }
  0xf5   : > { %v502_v15 = vmax.f32 %v461_v13, %v486_v14 }
  0xf7   : > { %1176 = vmatmul.msk.f32.gmra.mxu1 %vm519_vm2, %v502_v15 }
  0xf8   : > { %v463_v19 = vpop.f32.mrf.mxu0 }
  0xf9   : > { %v464_v20 = vadd.f32 %v1477_v29, %v463_v19 }
  0xfb   : > { %v487_v21 = vmul.f32 0.01, %v464_v20 }
  0xfd   : > { %v503_v23 = vmax.f32 %v464_v20, %v487_v21 }
  0xff   : > { %1177 = vmatmul.msk.f32.vlgmr.msrb.gmra.mxu3 %vm519_vm2, %v503_v23 }
 0x107   : > { %1178 = vmatmul.msk.f32.gmra.mxu3 %vm519_vm2, %v504_v31 }
 0x10f   : > { %1179 = vmatmul.msk.f32.gmra.mxu3 %vm519_vm2, %v505_v35 }
 0x117   : > { %1180 = vmatmul.msk.f32.gmra.mxu3 %vm519_vm2, %v506_v38 }
 0x11c   : > { %v585_v40 = vpop.f32.mrf.mxu1 }
 0x11d   : > { %v586_v41 = vadd.f32 %v1538_v39, %v585_v40 }
 0x11f   : > { %v633_v42 = vmul.f32 0.01, %v586_v41 }
 0x121   : > { %v649_v43 = vmax.f32 %v586_v41, %v633_v42 }
 0x123   : > { %1181 = vmatmul.msk.f32.vlgmr.msra.gmra.mxu2 %vm519_vm2, %v649_v43 }
 0x124   : > { %v588_v44 = vpop.f32.mrf.mxu1 }
 0x125   : > { %v589_v29 = vadd.f32 %v1538_v39, %v588_v44 }
 0x127   : > { %v634_v45 = vmul.f32 0.01, %v589_v29 }
 0x129   : > { %v650_v46 = vmax.f32 %v589_v29, %v634_v45 }
 0x12b   : > { %1182 = vmatmul.msk.f32.gmra.mxu2 %vm519_vm2, %v650_v46 }
 0x12c   : > { %v591_v47 = vpop.f32.mrf.mxu1 }
 0x12d   : > { %v592_v48 = vadd.f32 %v1538_v39, %v591_v47 }
 0x12f   : > { %v635_v49 = vmul.f32 0.01, %v592_v48 }
 0x131   : > { %v651_v50 = vmax.f32 %v592_v48, %v635_v49  ;;  %v1335_v48 = vmov 32  }
 0x132   : > { %1256 = vset.pattern.permute.xlu2 %v1335_v48  ;;  %1257 = vset.pattern.permute.xlu1 %v1335_v48 }
 0x133   : > { %1183 = vmatmul.msk.f32.gmra.mxu2 %vm519_vm2, %v651_v50  ;;  %1258 = vset.pattern.permute.xlu0 %v1335_v48  ;;  %v1585_v50 = vld [vmem:[%s1727_s7] ss:$0 sm:$0xff] }
 0x134   : > { %v594_v51 = vpop.f32.mrf.mxu1 }
 0x135   : > { %v595_v52 = vadd.f32 %v1538_v39, %v594_v51 }
 0x137   : > { %v636_v53 = vmul.f32 0.01, %v595_v52 }
 0x139   : > { %v652_v54 = vmax.f32 %v595_v52, %v636_v53 }
 0x13b   : > { %1184 = vmatmul.msk.f32.gmra.mxu2 %vm519_vm2, %v652_v54 }
 0x13c   : > { %v597_v55 = vpop.f32.mrf.mxu1 }
 0x13d   : > { %v598_v56 = vadd.f32 %v1538_v39, %v597_v55 }
 0x13f   : > { %v637_v57 = vmul.f32 0.01, %v598_v56 }
 0x141   : > { %v653_v58 = vmax.f32 %v598_v56, %v637_v57 }
 0x143   : > { %1185 = vmatmul.msk.f32.gmra.mxu2 %vm519_vm2, %v653_v58 }
 0x144   : > { %v600_v59 = vpop.f32.mrf.mxu1 }
 0x145   : > { %v601_v60 = vadd.f32 %v1538_v39, %v600_v59 }
 0x147   : > { %v638_v61 = vmul.f32 0.01, %v601_v60 }
 0x149   : > { %v654_v62 = vmax.f32 %v601_v60, %v638_v61 }
 0x14b   : > { %1186 = vmatmul.msk.f32.gmra.mxu2 %vm519_vm2, %v654_v62 }
 0x14c   : > { %v603_v63 = vpop.f32.mrf.mxu1 }
 0x14d   : > { %v604_v0 = vadd.f32 %v1538_v39, %v603_v63 }
 0x14f   : > { %v639_v1 = vmul.f32 0.01, %v604_v0 }
 0x151   : > { %v655_v2 = vmax.f32 %v604_v0, %v639_v1 }
 0x153   : > { %1187 = vmatmul.msk.f32.gmra.mxu2 %vm519_vm2, %v655_v2 }
 0x154   : > { %v606_v3 = vpop.f32.mrf.mxu1 }
 0x155   : > { %v607_v4 = vadd.f32 %v1538_v39, %v606_v3 }
 0x157   : > { %v640_v5 = vmul.f32 0.01, %v607_v4 }
 0x159   : > { %v656_v6 = vmax.f32 %v607_v4, %v640_v5 }
 0x15b   : > { %1188 = vmatmul.msk.f32.gmra.mxu2 %vm519_vm2, %v656_v6 }
 0x15c   : > { %v609_v7 = vpop.f32.mrf.mxu1 }
 0x15d   : > { %v610_v8 = vadd.f32 %v1538_v39, %v609_v7 }
 0x15f   : > { %v641_v9 = vmul.f32 0.01, %v610_v8 }
 0x161   : > { %v657_v10 = vmax.f32 %v610_v8, %v641_v9 }
 0x163   : > { %1189 = vmatmul.msk.f32.gmra.mxu2 %vm519_vm2, %v657_v10 }
 0x164   : > { %v612_v11 = vpop.f32.mrf.mxu1 }
 0x165   : > { %v613_v12 = vadd.f32 %v1538_v39, %v612_v11 }
 0x167   : > { %v642_v13 = vmul.f32 0.01, %v613_v12 }
 0x169   : > { %v658_v14 = vmax.f32 %v613_v12, %v642_v13 }
 0x16b   : > { %1190 = vmatmul.msk.f32.gmra.mxu2 %vm519_vm2, %v658_v14 }
 0x16c   : > { %v615_v15 = vpop.f32.mrf.mxu1 }
 0x16d   : > { %v616_v16 = vadd.f32 %v1538_v39, %v615_v15 }
 0x16f   : > { %v643_v17 = vmul.f32 0.01, %v616_v16 }
 0x171   : > { %v659_v18 = vmax.f32 %v616_v16, %v643_v17 }
 0x173   : > { %1191 = vmatmul.msk.f32.gmra.mxu2 %vm519_vm2, %v659_v18 }
 0x174   : > { %v618_v19 = vpop.f32.mrf.mxu1 }
 0x175   : > { %v619_v20 = vadd.f32 %v1538_v39, %v618_v19 }
 0x177   : > { %v644_v21 = vmul.f32 0.01, %v619_v20 }
 0x179   : > { %v660_v22 = vmax.f32 %v619_v20, %v644_v21 }
 0x17b   : > { %1192 = vmatmul.msk.f32.gmra.mxu2 %vm519_vm2, %v660_v22 }
 0x182   : > { %v621_v23 = vpop.f32.mrf.mxu3 }
 0x183   : > { %v622_v24 = vadd.f32 %v1538_v39, %v621_v23 }
 0x185   : > { %v645_v25 = vmul.f32 0.01, %v622_v24 }
 0x187   : > { %v661_v26 = vmax.f32 %v622_v24, %v645_v25 }
 0x189   : > { %1193 = vmatmul.msk.f32.vlgmr.msra.gmra.mxu3 %vm519_vm2, %v661_v26 }
 0x18a   : > { %v624_v27 = vpop.f32.mrf.mxu3 }
 0x18b   : > { %v625_v28 = vadd.f32 %v1538_v39, %v624_v27 }
 0x18d   : > { %v646_v30 = vmul.f32 0.01, %v625_v28 }
 0x18f   : > { %v662_v31 = vmax.f32 %v625_v28, %v646_v30 }
 0x191   : > { %1194 = vmatmul.msk.f32.gmra.mxu3 %vm519_vm2, %v662_v31 }
 0x192   : > { %v627_v32 = vpop.f32.mrf.mxu3 }
 0x193   : > { %v628_v33 = vadd.f32 %v1538_v39, %v627_v32 }
 0x195   : > { %v647_v34 = vmul.f32 0.01, %v628_v33 }
 0x197   : > { %v663_v35 = vmax.f32 %v628_v33, %v647_v34 }
 0x199   : > { %1195 = vmatmul.msk.f32.gmra.mxu3 %vm519_vm2, %v663_v35 }
 0x19a   : > { %v630_v36 = vpop.f32.mrf.mxu3 }
 0x19b   : > { %v631_v37 = vadd.f32 %v1538_v39, %v630_v36 }
 0x19d   : > { %v648_v38 = vmul.f32 0.01, %v631_v37 }
 0x19f   : > { %v664_v40 = vmax.f32 %v631_v37, %v648_v38 }
 0x1a1   : > { %1196 = vmatmul.msk.f32.gmra.mxu3 %vm519_vm2, %v664_v40 }
 0x1a6   : > { %v1572_v41 = vpop.f32.mrf.mxu2 }
 0x1ae   : > { %v745_v42 = vpop.f32.mrf.mxu2 }
 0x1af   : > { %v1607_v6 = vadd.f32 %v1585_v50, %v745_v42 }
 0x1b1   : > { %v791_v9 = vmul.f32 0.5, %v1607_v6 }
 0x1b6   : > { %v1574_v43 = vpop.f32.mrf.mxu2 }
 0x1b7   : > { %v1629_v34 = vadd.f32 %v1585_v50, %v1574_v43 }
 0x1be   : > { %v1576_v44 = vpop.f32.mrf.mxu2 }
 0x1c6   : > { %v754_v29 = vpop.f32.mrf.mxu2 }
 0x1c7   : > { %v1600_v62 = vadd.f32 %v1585_v50, %v754_v29 }
 0x1c9   : > { %v794_v1 = vmul.f32 0.5, %v1600_v62 }
 0x1ce   : > { %v757_v45 = vpop.f32.mrf.mxu2 }
 0x1cf   : > { %v1620_v24 = vadd.f32 %v1585_v50, %v757_v45  ;;  %v792_v45 = vmul.f32 0.5, %v1629_v34 }
 0x1d1   : > { %v795_v31 = vmul.f32 0.5, %v1620_v24 }
 0x1d6   : > { %v1578_v46 = vpop.f32.mrf.mxu2 }
 0x1de   : > { %v763_v47 = vpop.f32.mrf.mxu2 }
 0x1df   : > { %v1592_v55 = vadd.f32 %v1585_v50, %v763_v47 }
 0x1e1   : > { %v797_v60 = vmul.f32 0.5, %v1592_v55 }
 0x1e6   : > { %v766_v39 = vpop.f32.mrf.mxu2 }
 0x1e7   : > { %v1612_v13 = vadd.f32 %v1585_v50, %v766_v39 }
 0x1e9   : > { %v798_v19 = vmul.f32 0.5, %v1612_v13 }
 0x1ee   : > { %v1580_v49 = vpop.f32.mrf.mxu2 }
 0x1ef   : > { %v1633_v37 = vadd.f32 %v1585_v50, %v1580_v49  ;;  %v1643_v49 = vadd.f32 %v1585_v50, %v1578_v46 }
 0x1f1   : > { %v799_v47 = vmul.f32 0.5, %v1633_v37 }
 0x1f6   : > { %v772_v51 = vpop.f32.mrf.mxu2 }
 0x1f7   : > { %v1588_v52 = vadd.f32 %v1585_v50, %v772_v51 }
 0x1f9   : > { %v800_v53 = vmul.f32 0.5, %v1588_v52 }
 0x1fb   : > { %1262 = vtanh.f32 %v800_v53 }
 0x1fe   : > { %v775_v54 = vpop.f32.mrf.mxu2 }
 0x1ff   : > { %v1595_v56 = vadd.f32 %v1585_v50, %v775_v54 }
 0x201   : > { %v1263_v57 = vpop.eup %1262  ;;  %v801_v58 = vmul.f32 0.5, %v1595_v56 }
 0x202   : > { %v832_v59 = vadd.f32 1.0, %v1263_v57 }
 0x203   : > { %1264 = vtanh.f32 %v801_v58  ;;  %v796_v58 = vmul.f32 0.5, %v1643_v49 }
 0x204   : > { %v848_v61 = vmul.f32 0.5, %v832_v59  ;;  %1266 = vtanh.f32 %v797_v60 }
 0x205   : > { %1268 = vtanh.f32 %v794_v1 }
 0x206   : > { %906 = vperm.xlu2 %1256, %v848_v61  }
 0x209   : > { %v1265_v63 = vpop.eup %1264 }
 0x20a   : > { %v833_v0 = vadd.f32 1.0, %v1265_v63  ;;  %v1267_v4 = vpop.eup %1266 }
 0x20b   : > { %v829_v8 = vadd.f32 1.0, %v1267_v4  ;;  %v1269_v12 = vpop.eup %1268 }
 0x20c   : > { %v778_v2 = vpop.f32.mrf.mxu3  ;;  %v849_v3 = vmul.f32 0.5, %v833_v0  ;;  %v826_v18 = vadd.f32 1.0, %v1269_v12  ;;  %v1648_v0 = vadd.f32 %v1585_v50, %v1576_v44 }
 0x20d   : > { %v1604_v5 = vadd.f32 %v1585_v50, %v778_v2  ;;  %v845_v11 = vmul.f32 0.5, %v829_v8  ;;  %v1653_v8 = vadd.f32 %v1585_v50, %v1572_v41 }
 0x20e   : > { %911 = vperm.xlu2 %1256, %v849_v3   ;;  %v842_v22 = vmul.f32 0.5, %v826_v18  ;;  %v793_v2 = vmul.f32 0.5, %v1648_v0 }
 0x20f   : > { %v802_v7 = vmul.f32 0.5, %v1604_v5 }
 0x211   : > { %1270 = vtanh.f32 %v802_v7 }
 0x212   : > { %1272 = vtanh.f32 %v791_v9 }
 0x214   : > { %v781_v10 = vpop.f32.mrf.mxu3 }
 0x215   : > { %v1615_v14 = vadd.f32 %v1585_v50, %v781_v10  ;;  %v790_v10 = vmul.f32 0.5, %v1653_v8 }
 0x216   : > { %891 = vperm.xlu2 %1256, %v845_v11  }
 0x217   : > { %v1271_v15 = vpop.eup %1270  ;;  %v803_v16 = vmul.f32 0.5, %v1615_v14 }
 0x218   : > { %v834_v17 = vadd.f32 1.0, %v1271_v15  ;;  %v1273_v23 = vpop.eup %1272 }
 0x219   : > { %1274 = vtanh.f32 %v803_v16  ;;  %v823_v30 = vadd.f32 1.0, %v1273_v23  ;;  %v1661_v23 = vstv %s1197_s25 }
 0x21a   : > { %v850_v20 = vmul.f32 0.5, %v834_v17  ;;  %1276 = vtanh.f32 %v798_v19 }
 0x21b   : > { %v839_v36 = vmul.f32 0.5, %v823_v30 }
 0x21c   : > { %v784_v21 = vpop.f32.mrf.mxu3  ;;  %916 = vperm.xlu1 %1257, %v850_v20   ;;  %v951_v20 = vlaneseq }
 0x21d   : > { %v1623_v25 = vadd.f32 %v1585_v50, %v784_v21 }
 0x21e   : > { %876 = vperm.xlu2 %1256, %v842_v22  }
 0x21f   : > { %v1275_v26 = vpop.eup %1274  ;;  %v804_v27 = vmul.f32 0.5, %v1623_v25 }
 0x220   : > { %v835_v28 = vadd.f32 1.0, %v1275_v26  ;;  %v1277_v33 = vpop.eup %1276 }
 0x221   : > { %1278 = vtanh.f32 %v804_v27  ;;  %v830_v40 = vadd.f32 1.0, %v1277_v33 }
 0x222   : > { %v851_v32 = vmul.f32 0.5, %v835_v28  ;;  %1280 = vtanh.f32 %v795_v31 }
 0x223   : > { %v846_v39 = vmul.f32 0.5, %v830_v40 }
 0x224   : > { %v787_v35 = vpop.f32.mrf.mxu3  ;;  %921 = vperm.xlu1 %1257, %v851_v32  }
 0x225   : > { %v1636_v38 = vadd.f32 %v1585_v50, %v787_v35  ;;  %v1657_v50 = vshrl.u32 %v951_v20, 7 }
 0x226   : > { %861 = vperm.xlu2 %1256, %v839_v36  }
 0x227   : > { %v1279_v42 = vpop.eup %1278  ;;  %v805_v29 = vmul.f32 0.5, %v1636_v38  ;;  %v967_v22 = vadd.s32 120, %v1657_v50  ;;  %v966_v27 = vadd.s32 112, %v1657_v50  ;;  %v965_v31 = vadd.s32 104, %v1657_v50 }
 0x228   : > { %v836_v43 = vadd.f32 1.0, %v1279_v42  ;;  %v1281_v51 = vpop.eup %1280  ;;  %v964_v33 = vadd.s32 96, %v1657_v50  ;;  %v963_v40 = vadd.s32 88, %v1657_v50 }
 0x229   : > { %1282 = vtanh.f32 %v805_v29  ;;  %v827_v53 = vadd.f32 1.0, %v1281_v51  ;;  %v985_v30 = vadd.s32 %v1661_v23, %v967_v22  ;;  %v984_v32 = vadd.s32 %v1661_v23, %v966_v27 }
 0x22a   : > { %v852_v48 = vmul.f32 0.5, %v836_v43  ;;  %1284 = vtanh.f32 %v792_v45  ;;  %v983_v36 = vadd.s32 %v1661_v23, %v965_v31  ;;  %v982_v29 = vadd.s32 %v1661_v23, %v964_v33 }
 0x22b   : > { %1286 = vtanh.f32 %v799_v47  ;;  %v843_v61 = vmul.f32 0.5, %v827_v53  ;;  %vm1001_vm3 = vcmp.lt.s32.totalorder %v985_v30, 300  ;;  %vm1000_vm4 = vcmp.lt.s32.totalorder %v984_v32, 300 }
 0x22c   : > { %926 = vperm.xlu0 %1258, %v852_v48   ;;  %896 = vperm.xlu1 %1257, %v846_v39   ;;  %1288 = vtanh.f32 %v796_v58  ;;  %v962_v45 = vadd.s32 80, %v1657_v50  ;;  %vm999_vm5 = vcmp.lt.s32.totalorder %v983_v36, 300  ;;  %v981_v48 = vadd.s32 %v1661_v23, %v963_v40 }
 0x22d   : > { %1290 = vtanh.f32 %v793_v2  ;;  %v961_v39 = vadd.s32 72, %v1657_v50  ;;  %vm998_vm6 = vcmp.lt.s32.totalorder %v982_v29, 300 }
 0x22e   : > { %1292 = vtanh.f32 %v790_v10  ;;  %vm997_vm7 = vcmp.lt.s32.totalorder %v981_v48, 300  ;;  %v955_v10 = vadd.s32 24, %v1657_v50 }
 0x22f   : > { %v1283_v54 = vpop.eup %1282  ;;  %v979_v58 = vadd.s32 %v1661_v23, %v961_v39 }
 0x230   : > { %v837_v57 = vadd.f32 1.0, %v1283_v54  ;;  %v1285_v59 = vpop.eup %1284  ;;  %v960_v54 = vadd.s32 64, %v1657_v50 }
 0x231   : > { %v1287_v63 = vpop.eup %1286  ;;  %v824_v46 = vadd.f32 1.0, %v1285_v59  ;;  %v959_v59 = vadd.s32 56, %v1657_v50  ;;  %vm995_vm9 = vcmp.lt.s32.totalorder %v979_v58, 300 }
 0x232   : > { %v853_v60 = vmul.f32 0.5, %v837_v57  ;;  %v831_v1 = vadd.f32 1.0, %v1287_v63  ;;  %v1289_v7 = vpop.eup %1288 }
 0x233   : > { %v840_v4 = vmul.f32 0.5, %v824_v46  ;;  %v828_v9 = vadd.f32 1.0, %v1289_v7  ;;  %v1291_v11 = vpop.eup %1290 }
 0x234   : > { %931 = vperm.xlu0 %1258, %v853_v60   ;;  %881 = vperm.xlu1 %1257, %v843_v61   ;;  %v847_v3 = vmul.f32 0.5, %v831_v1  ;;  %v825_v12 = vadd.f32 1.0, %v1291_v11  ;;  %v1293_v16 = vpop.eup %1292  ;;  %v958_v61 = vadd.s32 48, %v1657_v50  ;;  %v957_v1 = vadd.s32 40, %v1657_v50 }
 0x235   : > { %v844_v44 = vmul.f32 0.5, %v828_v9  ;;  %v822_v17 = vadd.f32 1.0, %v1293_v16  ;;  %v954_v11 = vadd.s32 16, %v1657_v50 }
 0x236   : > { %v841_v15 = vmul.f32 0.5, %v825_v12  ;;  %v975_v9 = vadd.s32 %v1661_v23, %v957_v1 }
 0x237   : > { %v838_v18 = vmul.f32 0.5, %v822_v17 }
 0x238   : > { %vm991_vm13 = vcmp.lt.s32.totalorder %v975_v9, 300 }
 0x23c   : > { %901 = vperm.xlu0 %1258, %v847_v3   ;;  %866 = vperm.xlu1 %1257, %v840_v4   ;;  %v956_v3 = vadd.s32 32, %v1657_v50 }
 0x244   : > { %886 = vperm.xlu0 %1258, %v844_v44  }
 0x24c   : > { %871 = vperm.xlu0 %1258, %v841_v15   ;;  %v953_v15 = vadd.s32 8, %v1657_v50 }
 0x254   : > { %856 = vperm.xlu0 %1258, %v838_v18  }
 0x260   : > { %v907_v41 = vpop.permute.xlu2 %906 }
 0x261   : > { %v944_v63 = vmul.f32 %v907_v41, %v1588_v52 }
 0x268   : > { %v912_v28 = vpop.permute.xlu2 %911 }
 0x269   : > { %v945_v60 = vmul.f32 %v912_v28, %v1595_v56  ;;  %v976_v56 = vadd.s32 %v1661_v23, %v958_v61  ;;  %v950_v28 = vld [vmem:[%s1398_s13] sm:$0x3] }
 0x26b   : > { %vm992_vm12 = vcmp.lt.s32.totalorder %v976_v56, 300 }
 0x270   : > { %v892_v53 = vpop.permute.xlu2 %891 }
 0x271   : > { %v941_v44 = vmul.f32 %v892_v53, %v1592_v55  ;;  %v972_v55 = vadd.s32 %v1661_v23, %v954_v11 }
 0x273   : > { %vm988_vm0 = vcmp.lt.s32.totalorder %v972_v55, 300 }
 0x278   : > { %v877_v7 = vpop.permute.xlu2 %876 }
 0x279   : > { %v938_v17 = vmul.f32 %v877_v7, %v1600_v62  ;;  %v970_v62 = vadd.s32 %v1661_v23, %v1657_v50 }
 0x27b   : > { %vm986_vm2 = vcmp.lt.s32.totalorder %v970_v62, 300 }
 0x280   : > { %v862_v22 = vpop.permute.xlu2 %861 }
 0x28e   : > { %v917_v19 = vpop.permute.xlu1 %916 }
 0x28f   : > { %v946_v57 = vmul.f32 %v917_v19, %v1604_v5  ;;  %v977_v5 = vadd.s32 %v1661_v23, %v959_v59 }
 0x291   : > { %vm993_vm11 = vcmp.lt.s32.totalorder %v977_v5, 300 }
 0x296   : > { %v922_v26 = vpop.permute.xlu1 %921 }
 0x297   : > { %v947_v51 = vmul.f32 %v922_v26, %v1615_v14  ;;  %v978_v14 = vadd.s32 %v1661_v23, %v960_v54  ;;  %v935_v26 = vmul.f32 %v862_v22, %v1607_v6 }
 0x299   : > { %vm994_vm10 = vcmp.lt.s32.totalorder %v978_v14, 300 }
 0x29e   : > { %v927_v21 = vpop.permute.xlu0 %926  ;;  %v897_v47 = vpop.permute.xlu1 %896 }
 0x29f   : > { %v948_v43 = vmul.f32 %v927_v21, %v1623_v25  ;;  %v942_v4 = vmul.f32 %v897_v47, %v1612_v13  ;;  %v973_v13 = vadd.s32 %v1661_v23, %v955_v10  ;;  %v1051_v21 = vand.u32 127, %v951_v20 }
 0x2a1   : > { %vm989_vm15 = vcmp.lt.s32.totalorder %v973_v13, 300  ;;  %v1052_v27 = vadd.s32 %v1051_v21, %v1661_v23 }
 0x2a6   : > { %v932_v35 = vpop.permute.xlu0 %931  ;;  %v882_v2 = vpop.permute.xlu1 %881 }
 0x2a7   : > { %v949_v42 = vmul.f32 %v932_v35, %v1636_v38  ;;  %v980_v38 = vadd.s32 %v1661_v23, %v962_v45  ;;  %v939_v16 = vmul.f32 %v882_v2, %v1620_v24 }
 0x2a9   : > { %1198 = vmatpush.msk.msrb.mxu3 %vm1001_vm3, %v949_v42  ;;  %vm996_vm8 = vcmp.lt.s32.totalorder %v980_v38, 300  ;;  %vm1053_vm3 = vcmp.lt.s32.totalorder %v1052_v27, 300 }
 0x2ab   : > { %1199 = vmatpush.msk.msrb.mxu3 %vm1000_vm4, %v948_v43  ;;  %vm1079_vm4 = vcmask 254976  }
 0x2ad   : > { %1200 = vmatpush.msk.msrb.mxu3 %vm999_vm5, %v947_v51 }
 0x2ae   : > { %v902_v25 = vpop.permute.xlu0 %901  ;;  %v867_v18 = vpop.permute.xlu1 %866 }
 0x2af   : > { %1201 = vmatpush.msk.msrb.mxu3 %vm998_vm6, %v946_v57  ;;  %v943_v46 = vmul.f32 %v902_v25, %v1633_v37  ;;  %v974_v37 = vadd.s32 %v1661_v23, %v956_v3  ;;  %v936_v24 = vmul.f32 %v867_v18, %v1629_v34  ;;  %v1057_v34 = vld [vmem:[#allocation2] sm:$0x3] }
 0x2b1   : > { %1202 = vmatpush.msk.msrb.mxu3 %vm997_vm7, %v945_v60  ;;  %vm990_vm14 = vcmp.lt.s32.totalorder %v974_v37, 300 }
 0x2b3   : > { %1203 = vmatpush.msk.msrb.mxu3 %vm996_vm8, %v944_v63 }
 0x2b5   : > { %1204 = vmatpush.msk.msrb.mxu3 %vm995_vm9, %v943_v46 }
 0x2b6   : > { %v887_v52 = vpop.permute.xlu0 %886 }
 0x2b7   : > { %1205 = vmatpush.msk.msrb.mxu3 %vm994_vm10, %v942_v4  ;;  %v940_v12 = vmul.f32 %v887_v52, %v1643_v49  ;;  %v971_v49 = vadd.s32 %v1661_v23, %v953_v15 }
 0x2b9   : > { %1206 = vmatpush.msk.msrb.mxu3 %vm993_vm11, %v941_v44  ;;  %vm987_vm1 = vcmp.lt.s32.totalorder %v971_v49, 300 }
 0x2bb   : > { %1207 = vmatpush.msk.msrb.mxu3 %vm992_vm12, %v940_v12 }
 0x2bd   : > { %1208 = vmatpush.msk.msrb.mxu3 %vm991_vm13, %v939_v16 }
 0x2be   : > { %v872_v19 = vpop.permute.xlu0 %871 }
 0x2bf   : > { %v937_v41 = vmul.f32 %v872_v19, %v1648_v0  ;;  %1209 = vmatpush.msk.msrb.mxu3 %vm990_vm14, %v938_v17 }
 0x2c1   : > { %1210 = vmatpush.msk.msrb.mxu3 %vm989_vm15, %v937_v41 }
 0x2c3   : > { %1211 = vmatpush.msk.msrb.mxu3 %vm988_vm0, %v936_v24 }
 0x2c5   : > { %1212 = vmatpush.msk.msrb.mxu3 %vm987_vm1, %v935_v26 }
 0x2c6   : > { %v857_v0 = vpop.permute.xlu0 %856 }
 0x2c7   : > { %v934_v20 = vmul.f32 %v857_v0, %v1653_v8 }
 0x2c9   : > { %1213 = vmatpush.msk.msrb.mxu3 %vm986_vm2, %v934_v20 }
 0x2ca   : > { %1214 = vmatmul.msk.f32.vlgmr.msrb.gmra.mxu3 %vm1053_vm3, %v950_v28 }
 0x34d   : > { %v1075_v6 = vpop.f32.mrf.mxu3 }
 0x34e   : > { %v1078_v50 = vadd.f32 %v1075_v6, %v1057_v34 }
 0x350   : > { %1080 = vst.msk [vmem:[#allocation2] sm:$0x3] %vm1079_vm4, %v1078_v50 }
 0x351   : > { %1240 = dma.vmem_to_hbm [thread:$0]  (%p1243_p6), %s1088_s29, 32, %s1090_s10, [#allocation3]  }
 0x352   : > { %1327 = dma.done.wait (%p1243_p6), [#allocation3], 32  }
 0x353   : > { %1329 = vsyncadd (%p1243_p6), [#allocation3], 4294967264 }
 0x354 PF: > { %s19_s27 = sadd.s32 1, %s1332_s27  }
 0x355   : > { %p16_p7 = scmp.ge.s32.totalorder %s19_s27, 5  }
 0x357   :  { %18 = sbr.rel (!%p16_p7) target bundleno = 1 (0x1), region = 86 }
 0x35c   :  { %1103 = vsyncpa [#allocation3], 1 }
 0x35d   :  { %1105 = vsyncpa [#allocation3 + $0x1], 1 }

</bundles_post_ra>
